<compile_context>
chip_gen: v7x
topology: tpu7x:2x2x1
jax: 0.10.0
libtpu: 0.0.40
codegen_flags: <defaults>
</compile_context>

<pallas_src>
import jax
import jax.numpy as jnp
from jax.experimental import pallas as pl
from jax.experimental.pallas import tpu as pltpu


_TB_MIN = 8  # sublane multiple for the (TB, H) output slab


def _attention_kernel(x_ref, w_ref, b_ref, o_ref):
    # x_ref : (TB, T, H) VMEM tile of lstm_out
    # w_ref : (1, H)     VMEM linear weight row (f32)
    # b_ref : (1,)       SMEM linear bias (f32)
    # o_ref : (TB, H)    lane-dense output slab
    # TODO(synk): for bf16 inputs on v6e/v7x the two full-tile multiplies could
    # stay in bf16 (f32 accumulation) to halve VPU work; f32 kept for accuracy.
    x = x_ref[...].astype(jnp.float32)                    # (TB, T, H)
    w = w_ref[...].astype(jnp.float32)                    # (1, H)
    bias = b_ref[0]

    # scores = Linear(x): broadcast-mul + lane reduce (VPU/XLU, no MXU).
    # Keep scores 2-D so T maps to the 128-lane axis for the softmax.
    scores = jnp.sum(x * w[None, :, :], axis=-1) + bias   # (TB, T)

    # softmax over the sequence axis (dim=1), max-stabilized, exact division.
    m = jnp.max(scores, axis=-1, keepdims=True)           # (TB, 1)
    e = jnp.exp(scores - m)                                # (TB, T)
    denom = jnp.sum(e, axis=-1, keepdims=True)             # (TB, 1)
    weights = e / denom                                    # (TB, T)

    # weighted sum over T -> (TB, H); expand weights only for this multiply.
    o_ref[...] = jnp.sum(weights[:, :, None] * x, axis=1).astype(o_ref.dtype)


def _round_up(x, m):
    return ((x + m - 1) // m) * m


def _choose_tb(batch, bytes_per_row, target_tile_bytes, multi_tc):
    """Batch rows per grid step (leading block dim: no (8,128) constraint)."""
    if batch <= _TB_MIN:
        return batch                                      # single full block
    tb = (int(target_tile_bytes) // max(int(bytes_per_row), 1) // _TB_MIN) * _TB_MIN
    tb = max(_TB_MIN, min(tb, _round_up(batch, _TB_MIN)))
    if multi_tc and tb > _TB_MIN:
        # v7x: shard the "parallel" batch axis across 2 TensorCores with an
        # even (balanced) number of grid steps.  On 1-TC parts the grid is a
        # serial loop, so we keep the single biggest tile there.
        steps = pl.cdiv(batch, tb)
        if steps < 2 or steps % 2:
            steps = _round_up(max(steps, 2), 2)
            tb = max(_TB_MIN, _round_up(pl.cdiv(batch, steps), _TB_MIN))
    return tb


def attention_forward(lstm_out, weight, bias):
    """lstm_out: (B, T, H); weight: (1, H); bias: (1,) -> (B, H)"""
    B, T, H = lstm_out.shape

    w_row = weight.reshape(1, H).astype(jnp.float32)
    b_vec = bias.reshape(1).astype(jnp.float32)

    # --- generation-aware tile sizing via VMEM capacity ----------------------
    try:
        vmem_cap = int(pltpu.get_tpu_info().vmem_capacity_bytes)
    except Exception:
        vmem_cap = None
    if vmem_cap is None:
        vmem_limit = 32 << 20                     # conservative: fits all gens
        multi_tc = False
    else:
        vmem_limit = min(vmem_cap // 2, 64 << 20)  # 64 MiB v5e/v6e, 32 MiB v7x
        multi_tc = vmem_cap < (100 << 20)          # v7x: 64 MiB VMEM/TC, 2 TCs
    # Only x is double-buffered at meaningful size (weight row / output slab
    # are KiB-scale), so a quarter of the scoped limit per input buffer is safe.
    target_tile_bytes = max(1 << 20, vmem_limit // 4)

    bytes_per_row = T * H * lstm_out.dtype.itemsize
    tb = _choose_tb(B, bytes_per_row, target_tile_bytes, multi_tc)
    grid = (pl.cdiv(B, tb),)

    # TODO(synk): for very long sequences (2 * tb*T*H tiles exceeding the VMEM
    # limit), add a second "arbitrary" grid axis over T with an online-softmax
    # accumulator (running max / denom / partial (TB,H) sum in VMEM scratch).
    # TODO(synk): if production H < 128, have the producer emit a (B, H, T)
    # layout (T on lanes) so x tiles are not mostly lane padding.

    out = pl.pallas_call(
        _attention_kernel,
        out_shape=jax.ShapeDtypeStruct((B, H), lstm_out.dtype),
        grid_spec=pltpu.PrefetchScalarGridSpec(
            num_scalar_prefetch=0,
            grid=grid,
            in_specs=[
                pl.BlockSpec((tb, T, H), lambda i: (i, 0, 0)),       # batched rows
                pl.BlockSpec((1, H), lambda i: (0, 0)),              # shared weight row
                pl.BlockSpec(memory_space=pltpu.MemorySpace.SMEM),   # scalar bias
            ],
            out_specs=pl.BlockSpec((tb, H), lambda i: (i, 0)),       # lane-dense slab
        ),
        compiler_params=pltpu.CompilerParams(
            dimension_semantics=("parallel",),
            vmem_limit_bytes=vmem_limit,
        ),
    )(lstm_out, w_row, b_vec)

    return out


def _reference(lstm_out, weight, bias):
    # pure-JAX reference of the PyTorch forward
    scores = jnp.einsum("bth,oh->bto", lstm_out, weight)[..., 0] + bias[0]  # (B, T)
    w = jax.nn.softmax(scores, axis=1)                                      # (B, T)
    return jnp.einsum("bt,bth->bh", w, lstm_out)                            # (B, H)


if __name__ == "__main__":
    B, T, H = 2, 8, 32

    key = jax.random.PRNGKey(0)
    k_x, k_w, k_b = jax.random.split(key, 3)

    # Deterministic init matching nn.Linear(H, 1): U(-1/sqrt(H), 1/sqrt(H))
    bound = 1.0 / (H ** 0.5)
    weight = jax.random.uniform(k_w, (1, H), jnp.float32, -bound, bound)
    bias = jax.random.uniform(k_b, (1,), jnp.float32, -bound, bound)

    lstm_out = jax.random.normal(k_x, (B, T, H), jnp.float32)

    out = attention_forward(lstm_out, weight, bias)
    out = jax.block_until_ready(out)

    ref = _reference(lstm_out, weight, bias)
    assert out.shape == (B, H)
    assert jnp.allclose(out, ref, atol=1e-5, rtol=1e-5), "mismatch vs reference"

    print("KERNEL_OK")
</pallas_src>

<mosaic_0001>
module attributes {stable_mosaic.version = 11 : i64} {
  func.func @_attention_kernel(%arg0: i32, %arg1: memref<2x8x32xf32, #tpu.memory_space<vmem>>, %arg2: memref<1x32xf32, #tpu.memory_space<vmem>>, %arg3: memref<1xf32, #tpu.memory_space<smem>>, %arg4: memref<2x32xf32, #tpu.memory_space<vmem>>) attributes {dimension_semantics = [#tpu.dimension_semantics<parallel>], iteration_bounds = array<i64: 1>, scalar_prefetch = 0 : i64, scratch_operands = 0 : i64, tpu.core_type = #tpu.core_type<tc>, window_params = [{transform_indices = @transform_0, window_bounds = array<i64: 2, 8, 32>}, {pipeline_mode = #tpu.pipeline_mode<synchronous>, transform_indices = @transform_1, window_bounds = array<i64: 1, 32>}, {transform_indices = @transform_2, window_bounds = array<i64: 1>}, {transform_indices = @transform_3, window_bounds = array<i64: 2, 32>}]} {
    %c0 = arith.constant 0 : index
    %c0_0 = arith.constant 0 : index
    %c0_1 = arith.constant 0 : index
    %0 = vector.load %arg1[%c0, %c0_0, %c0_1] : memref<2x8x32xf32, #tpu.memory_space<vmem>>, vector<2x8x32xf32>
    %c0_2 = arith.constant 0 : index
    %c0_3 = arith.constant 0 : index
    %1 = vector.load %arg2[%c0_2, %c0_3] : memref<1x32xf32, #tpu.memory_space<vmem>>, vector<1x32xf32>
    %c0_4 = arith.constant 0 : index
    %2 = memref.load %arg3[%c0_4] : memref<1xf32, #tpu.memory_space<smem>>
    %3 = vector.shape_cast %1 : vector<1x32xf32> to vector<1x1x32xf32>
    %4 = vector.broadcast %3 : vector<1x1x32xf32> to vector<2x8x32xf32>
    %5 = arith.mulf %0, %4 : vector<2x8x32xf32>
    %cst = arith.constant dense<0.000000e+00> : vector<2x8xf32>
    %6 = vector.multi_reduction <add>, %5, %cst [2] : vector<2x8x32xf32> to vector<2x8xf32>
    %7 = vector.broadcast %2 : f32 to vector<2x8xf32>
    %8 = arith.addf %6, %7 : vector<2x8xf32>
    %cst_5 = arith.constant dense<0xFF800000> : vector<2xf32>
    %9 = vector.multi_reduction <maximumf>, %8, %cst_5 [1] : vector<2x8xf32> to vector<2xf32>
    %10 = vector.shape_cast %9 : vector<2xf32> to vector<2x1xf32>
    %11 = vector.broadcast %10 : vector<2x1xf32> to vector<2x8xf32>
    %12 = arith.subf %8, %11 : vector<2x8xf32>
    %13 = math.exp %12 : vector<2x8xf32>
    %cst_6 = arith.constant dense<0.000000e+00> : vector<2xf32>
    %14 = vector.multi_reduction <add>, %13, %cst_6 [1] : vector<2x8xf32> to vector<2xf32>
    %15 = vector.shape_cast %14 : vector<2xf32> to vector<2x1xf32>
    %16 = vector.broadcast %15 : vector<2x1xf32> to vector<2x8xf32>
    %17 = arith.divf %13, %16 : vector<2x8xf32>
    %18 = vector.shape_cast %17 : vector<2x8xf32> to vector<2x8x1xf32>
    %19 = vector.broadcast %18 : vector<2x8x1xf32> to vector<2x8x32xf32>
    %20 = arith.mulf %19, %0 : vector<2x8x32xf32>
    %cst_7 = arith.constant dense<0.000000e+00> : vector<2x32xf32>
    %21 = vector.multi_reduction <add>, %20, %cst_7 [1] : vector<2x8x32xf32> to vector<2x32xf32>
    %c0_8 = arith.constant 0 : index
    %c0_9 = arith.constant 0 : index
    %22 = vector.load %arg4[%c0_8, %c0_9] : memref<2x32xf32, #tpu.memory_space<vmem>>, vector<2x32xf32>
    tpu.vector_store %arg4[%c0_8, %c0_9], %21 {strides = array<i32>} : memref<2x32xf32, #tpu.memory_space<vmem>>, vector<2x32xf32>,
    return
  }
  func.func @transform_0(%arg0: i32) -> (i32, i32, i32) {
    %c0_i32 = arith.constant 0 : i32
    %c0_i32_0 = arith.constant 0 : i32
    %c0_i32_1 = arith.constant 0 : i32
    return %arg0, %c0_i32, %c0_i32_0 : i32, i32, i32
  }
  func.func @transform_1(%arg0: i32) -> (i32, i32) {
    %c0_i32 = arith.constant 0 : i32
    %c0_i32_0 = arith.constant 0 : i32
    %c0_i32_1 = arith.constant 0 : i32
    return %c0_i32, %c0_i32_0 : i32, i32
  }
  func.func @transform_2(%arg0: i32) -> i32 {
    %c0_i32 = arith.constant 0 : i32
    %c0_i32_0 = arith.constant 0 : i32
    return %c0_i32 : i32
  }
  func.func @transform_3(%arg0: i32) -> (i32, i32) {
    %c0_i32 = arith.constant 0 : i32
    %c0_i32_0 = arith.constant 0 : i32
    return %arg0, %c0_i32 : i32, i32
  }
}

</mosaic_0001>

<bundles_post_ra>
// kernel: tpu_custom_call.1
= control target key start
LH: loop header
LB: loop body
LE: loop exit
PB: predicated region body
PF: predicated region fallthrough
CT: control target
= control target key end

     0   :  { %9 = vsyncpa [#allocation4], 0  ;;  %s307_s0 = inlined_call_operand.hbm [shape: f32[2,8,32], index: 0, kind: input, shape index: {}]   ;;  %s308_s1 = inlined_call_operand.vmem [shape: f32[1,32], index: 1, kind: input, shape index: {}]   ;;  %s309_s2 = inlined_call_operand.<no memory space> [shape: f32[1], index: 2, kind: input, shape index: {}]   ;;  %s310_s3 = inlined_call_operand.hbm [shape: f32[2,32], index: 3, kind: output, shape index: {}]  }
   0x1   :  { %10 = vsyncpa [#allocation5], 0  ;;  %s235_s12 = smov [#allocation3]   ;;  %s187_s16 = scalar_lea.hbm %s307_s0, 256 }
   0x2   :  { %s16_s13 = sshll.u32 %s235_s12, 4  ;;  %p188_p0 = scmp.ne.s32.totalorder %s307_s0, %s187_s16  ;;  %s17_s13 = int_to_ptr.vmem [resolvable:$true] %s16_s13 }
   0x3   :  { %p191_p1 = scmp.lt.u32.totalorder %s187_s16, %s307_s0 }
   0x5   :  { %p193_p2 = pnand %p191_p1, %p188_p0 }
   0x7   :  { %196 = shalt.err (!%p193_p2)
}
   0x8   :  { %s197_s21 = scalar_lea.vmem %s17_s13, 256  ;;  %p202_p4 = scmp.lt.s32.totalorder %s17_s13, %s17_s13 }
   0x9   :  { %p198_p3 = scmp.ne.s32.totalorder %s17_s13, %s197_s21  ;;  %p203_p5 = scmp.lt.s32.totalorder %s197_s21, %s197_s21 }
   0xb   :  { %p204_p6 = por %p203_p5, %p202_p4 }
   0xd   :  { %p205_p7 = pnand %p204_p6, %p198_p3 }
   0xf   :  { %208 = shalt.err (!%p205_p7)
}
  0x10   :  { %s236_s22 = smov 128   ;;  %s237_s23 = smov 8  }
  0x11   :  { %22 = dma.hbm_to_vmem [thread:$0]  %s307_s0, 256, %s17_s13, [#allocation4], %s236_s22, %s236_s22, %s237_s23  }
  0x12   :  { %231 = dma.done.wait [#allocation4], 256  }
  0x13   :  { %232 = vsyncadd [#allocation4], 4294967040  ;;  %v272_v0 = vld [vmem:[#allocation3] sm:$0xff]  ;;  %vm42_vm0 = vcmask 261120   ;;  %v277_v2 = vld [vmem:[#allocation3 + $0x8] sm:$0xff]  ;;  %v54_v7 = vlaneseq  ;;  %v49_v10 = vstv %s309_s2  ;;  %vm64_vm1 = vcmask 1041409  }
  0x14   :  { %v171_v1 = vld [vmem:[%s308_s1] ss:$0 sm:$0xff]  ;;  %vm67_vm2 = vcmask 58368   ;;  %v238_v20 = vmov 0   ;;  %s239_s1 = smov [#allocation6]   ;;  %vm154_vm3 = vcmask 254976  }
  0x15   :  { %v40_v3 = vmul.f32 %v171_v1, %v272_v0  ;;  %v41_v4 = vmul.f32 %v171_v1, %v277_v2  ;;  %v55_v8 = vand.u32 127, %v54_v7  ;;  %v57_v9 = vshrl.u32 %v54_v7, 7  ;;  %178 = vset.pattern.permute.xlu0 %v238_v20  ;;  %177 = vset.pattern.permute.xlu1 %v238_v20  ;;  %s162_s2 = sshll.u32 %s239_s1, 4  ;;  %s163_s2 = int_to_ptr.vmem [resolvable:$true] %s162_s2 }
  0x16   :  { %s209_s29 = scalar_lea.vmem %s163_s2, 32  ;;  %p214_p9 = scmp.lt.s32.totalorder %s163_s2, %s163_s2 }
  0x17   :  { %v43_v5 = vsel %vm42_vm0, %v40_v3, 0.0  ;;  %v46_v6 = vsel %vm42_vm0, %v41_v4, 0.0  ;;  %v58_v12 = vsub.s32 %v55_v8, %v57_v9  ;;  %v74_v21 = vsub.s32 0, %v57_v9  ;;  %p210_p8 = scmp.ne.s32.totalorder %s163_s2, %s209_s29  ;;  %p215_p10 = scmp.lt.s32.totalorder %s209_s29, %s209_s29 }
  0x18   :  { %44 = vadd.xlane.f32.xlu0 %v43_v5  ;;  %v78_v22 = vsub.s32 1, %v57_v9 }
  0x19   :  { %p216_p11 = por %p215_p10, %p214_p9 }
  0x1b   :  { %p217_p12 = pnand %p216_p11, %p210_p8 }
  0x1c   :  { %47 = vadd.xlane.f32.xlu0 %v46_v6 }
  0xa5   :  { %v45_v11 = vpop.xlane.xlu0 %44 }
  0xa6   :  { %v50_v13 = vadd.f32 %v49_v10, %v45_v11 }
  0xa8   :  { %v59_v16 = vrot.slane %v50_v13, %v58_v12 }
  0xa9   :  { %v48_v14 = vpop.xlane.xlu0 %47 }
  0xaa   :  { %v51_v15 = vadd.f32 %v49_v10, %v48_v14 }
  0xac   :  { %v63_v17 = vrot.slane %v51_v15, %v58_v12 }
  0xae   :  { %v65_v18 = vsel %vm64_vm1, %v63_v17, %v59_v16 }
  0xaf   :  { %v68_v19 = vsel %vm67_vm2, %v65_v18, -inf }
  0xb0   :  { %69 = vmax.xlane.f32.xlu1 %v68_v19 }
 0x13d   :  { %v70_v23 = vpop.xlane.xlu1 %69 }
 0x13e   :  { %v75_v24 = vrot.slane %v70_v23, %v74_v21  ;;  %v79_v25 = vrot.slane %v70_v23, %v78_v22 }
 0x140   :  { %v82_v26 = vsub.f32 %v50_v13, %v75_v24  ;;  %v83_v27 = vsub.f32 %v51_v15, %v79_v25 }
 0x142   :  { %v84_v28 = vmul.f32 1.442695, %v82_v26  ;;  %v86_v29 = vmul.f32 1.442695, %v83_v27 }
 0x144   :  { %179 = vpow2.f32 %v84_v28 }
 0x145   :  { %181 = vpow2.f32 %v86_v29 }
 0x14e   :  { %v180_v30 = vpop.eup %179 }
 0x14f   :  { %v182_v31 = vpop.eup %181  ;;  %91 = vperm.xlu1 %177, %v180_v30  }
 0x150   :  { %94 = vperm.xlu0 %178, %v182_v31  }
 0x1ce   :  { %v92_v32 = vpop.permute.xlu1 %91 }
 0x1cf   :  { %v95_v33 = vpop.permute.xlu0 %94  ;;  %v99_v34 = vrot.slane %v92_v32, %v58_v12 }
 0x1d0   :  { %v103_v35 = vrot.slane %v95_v33, %v58_v12 }
 0x1d2   :  { %v104_v36 = vsel %vm64_vm1, %v103_v35, %v99_v34 }
 0x1d3   :  { %v106_v37 = vsel %vm67_vm2, %v104_v36, 0.0 }
 0x1d4   :  { %107 = vadd.xlane.f32.xlu1 %v106_v37 }
 0x261   :  { %v108_v38 = vpop.xlane.xlu1 %107 }
 0x262   :  { %v113_v39 = vrot.slane %v108_v38, %v74_v21  ;;  %v117_v40 = vrot.slane %v108_v38, %v78_v22 }
 0x264   :  { %183 = vrcp.f32 %v113_v39 }
 0x265   :  { %185 = vrcp.f32 %v117_v40 }
 0x26e   :  { %v184_v41 = vpop.eup %183 }
 0x26f   :  { %v121_v42 = vmul.f32 %v184_v41, %v180_v30  ;;  %v186_v43 = vpop.eup %185 }
 0x270   :  { %v123_v44 = vmul.f32 %v186_v43, %v182_v31 }
 0x271   :  { %126 = vperm.xlu0 %178, %v121_v42  }
 0x275   :  { %131 = vperm.xlu0 %178, %v123_v44  }
 0x2f0   :  { %v127_v45 = vpop.permute.xlu0 %126 }
 0x2f1   :  { %v134_v46 = vmul.f32 %v127_v45, %v272_v0 }
 0x2f3   :  { %v136_v47 = vsel %vm42_vm0, %v134_v46, 0.0 }
 0x2f4   :  { %v137_v48 = vrot.slane %v136_v47, 4  ;;  %v132_v49 = vpop.permute.xlu0 %131 }
 0x2f5   :  { %v135_v50 = vmul.f32 %v132_v49, %v277_v2 }
 0x2f6   :  { %v138_v51 = vadd.f32 %v137_v48, %v136_v47 }
 0x2f7   :  { %v143_v52 = vsel %vm42_vm0, %v135_v50, 0.0 }
 0x2f8   :  { %v139_v53 = vrot.slane %v138_v51, 2  ;;  %v144_v54 = vrot.slane %v143_v52, 4 }
 0x2fa   :  { %v140_v55 = vadd.f32 %v139_v53, %v138_v51  ;;  %v145_v56 = vadd.f32 %v144_v54, %v143_v52 }
 0x2fc   :  { %v146_v57 = vrot.slane %v145_v56, 2  ;;  %v141_v58 = vrot.slane %v140_v55, 1 }
 0x2fe   :  { %v147_v59 = vadd.f32 %v146_v57, %v145_v56  ;;  %v142_v61 = vadd.f32 %v141_v58, %v140_v55 }
 0x300   :  { %v148_v60 = vrot.slane %v147_v59, 1 }
 0x302   :  { %v149_v62 = vadd.f32 %v148_v60, %v147_v59 }
 0x304   :  { %v152_v63 = vsel %vm64_vm1, %v149_v62, %v142_v61 }
 0x305   :  { %155 = vst.msk [vmem:[#allocation6] sm:$0x3] %vm154_vm3, %v152_v63 }
 0x306   :  { %220 = shalt.err (!%p217_p12)
}
 0x307   :  { %s221_s5 = scalar_lea.hbm %s310_s3, 32 }
 0x308   :  { %p222_p13 = scmp.ne.s32.totalorder %s310_s3, %s221_s5  ;;  %p225_p0 = scmp.lt.u32.totalorder %s221_s5, %s310_s3 }
 0x30a   :  { %p227_p1 = pnand %p225_p0, %p222_p13 }
 0x30c   :  { %230 = shalt.err (!%p227_p1)
}
 0x30d   :  { %165 = dma.vmem_to_hbm [thread:$0]  %s163_s2, 32, %s310_s3, [#allocation5]  }
 0x30e   :  { %233 = dma.done.wait [#allocation5], 32  }
 0x30f   :  { %234 = vsyncadd [#allocation5], 4294967264 }
 0x310   :  { %169 = vsyncpa [#allocation4], 1 }
 0x311   :  { %170 = vsyncpa [#allocation5], 1 }

</bundles_post_ra>
